<compile_context>
chip_gen: v7x
topology: tpu7x:2x2x1
jax: 0.10.0
libtpu: 0.0.40
codegen_flags: <defaults>
</compile_context>

<pallas_src>
from functools import partial

import jax
import jax.numpy as jnp
from jax import lax
from jax.experimental import pallas as pl
from jax.experimental.pallas import tpu as pltpu

_EPS = 1e-8          # F.cosine_similarity clamps ||a||*||b|| at 1e-8
_NEG_BIG = -1e30     # "minus infinity" for masked (padded) logits


def _make_moco_kernel(inv_t: float, batch: int, tile_n: int):
    def kernel(nvalid_ref, q_ref, k_ref, neg_ref, nrm_ref, out_ref,
               m_sc, s_sc, nq_sc):
        t = pl.program_id(0)

        @pl.when(t == 0)
        def _init():
            m_sc[...] = jnp.full_like(m_sc, -jnp.inf)
            s_sc[...] = jnp.zeros_like(s_sc)
            q0 = q_ref[...]                                            # (B, D) f32
            nq_sc[...] = jnp.sqrt(jnp.sum(q0 * q0, axis=-1, keepdims=True))

        # raw bf16 matmul on the MXU: (B, TN) f32 accumulate
        q_bf = q_ref[...].astype(jnp.bfloat16)
        neg = neg_ref[...]                                             # (TN, D) bf16
        s_raw = lax.dot_general(q_bf, neg, (((1,), (1,)), ((), ())),
                                preferred_element_type=jnp.float32)

        # post-matmul cosine scaling with PyTorch's exact product clamp
        nn = nrm_ref[...]                                              # (1, TN) f32
        denom = jnp.maximum(nq_sc[...] * nn, _EPS)                     # (B, TN)
        logits = s_raw * (inv_t * pl.reciprocal(denom, approx=True))

        # additive padding penalty (cheap (1, TN) iota compare, broadcast add)
        col = lax.broadcasted_iota(jnp.int32, (1, tile_n), 1) + t * tile_n
        penalty = jnp.where(col < nvalid_ref[0], 0.0, _NEG_BIG)       # (1, TN)
        logits = logits + penalty

        # online logsumexp over the streamed negatives
        m_prev = m_sc[...]
        m_new = jnp.maximum(m_prev, jnp.max(logits, axis=-1, keepdims=True))
        a = jnp.exp(m_prev - m_new)
        s_sc[...] = a * s_sc[...] + jnp.sum(jnp.exp(logits - m_new),
                                            axis=-1, keepdims=True)
        m_sc[...] = m_new

        @pl.when(t == pl.num_programs(0) - 1)
        def _finalize():
            q = q_ref[...]
            k = k_ref[...]
            nq = nq_sc[...]
            # positive logit in f32 with the exact product clamp
            pos_dot = jnp.sum(q * k, axis=-1, keepdims=True)
            nk = jnp.sqrt(jnp.sum(k * k, axis=-1, keepdims=True))
            lp = (pos_dot / jnp.maximum(nq * nk, _EPS)) * inv_t        # (B, 1)

            # fold the positive column into the logsumexp analytically
            lse_neg = m_sc[...] + jnp.log(s_sc[...])
            mm = jnp.maximum(lse_neg, lp)
            lse = mm + jnp.log(jnp.exp(lse_neg - mm) + jnp.exp(lp - mm))

            out_ref[...] = (jnp.sum(lse - lp, axis=0, keepdims=True)
                            * (1.0 / batch))

    return kernel


def _pick_tile_n(n_rows: int, d: int, tile_n=None) -> int:
    if tile_n is not None:
        assert tile_n > 0 and tile_n % 128 == 0, "tile_n must be a multiple of 128"
        return int(tile_n)
    # ~8 MiB bf16 per streamed tile -> ~16 MiB double-buffered, comfortably
    # inside a 48 MiB scoped-VMEM budget even on v7x (64 MiB VMEM per TC).
    bytes_per_row = max(int(d), 1) * 2                      # bf16 stream
    rows = (8 * 1024 * 1024) // bytes_per_row
    rows = max(128, min(2048, (rows // 128) * 128))
    n_aligned = ((int(n_rows) + 127) // 128) * 128
    return min(rows, n_aligned)


@partial(jax.jit, static_argnames=("temperature", "tile_n"))
def _moco_loss_padded(feat_q, feat_k, neg_bf16, neg_norms, n_valid,
                      temperature, tile_n):
    """feat_q/feat_k: (B, D) f32; neg_bf16: (Np, D) bf16 (Np % tile_n == 0);
    neg_norms: (1, Np) f32; n_valid: int32 scalar (traced, no recompile)."""
    B, D = feat_q.shape
    Np = neg_bf16.shape[0]
    assert Np % tile_n == 0
    grid = (Np // tile_n,)
    n_valid_arr = jnp.asarray(n_valid, dtype=jnp.int32).reshape((1,))
    kernel = _make_moco_kernel(1.0 / float(temperature), B, tile_n)

    out = pl.pallas_call(
        kernel,
        out_shape=jax.ShapeDtypeStruct((1, 1), jnp.float32),
        grid_spec=pltpu.PrefetchScalarGridSpec(
            num_scalar_prefetch=1,
            grid=grid,
            in_specs=[
                pl.BlockSpec((B, D), lambda i, nv: (0, 0)),        # q (resident)
                pl.BlockSpec((B, D), lambda i, nv: (0, 0)),        # k (resident)
                pl.BlockSpec((tile_n, D), lambda i, nv: (i, 0)),   # neg (bf16 stream)
                pl.BlockSpec((1, tile_n), lambda i, nv: (0, i)),   # row norms (f32)
            ],
            out_specs=pl.BlockSpec((1, 1), lambda i, nv: (0, 0)),
            scratch_shapes=[
                pltpu.VMEM((B, 1), jnp.float32),    # running max
                pltpu.VMEM((B, 1), jnp.float32),    # running sum-exp
                pltpu.VMEM((B, 1), jnp.float32),    # ||q|| (hoisted)
            ],
        ),
        compiler_params=pltpu.CompilerParams(
            dimension_semantics=("arbitrary",),      # N is a reduction axis
            vmem_limit_bytes=48 * 1024 * 1024,
        ),
    )(n_valid_arr, feat_q.astype(jnp.float32), feat_k.astype(jnp.float32),
      neg_bf16, neg_norms)
    return out[0, 0]


def moco_logits_loss(feat_q, feat_k, negatives, temperature, tile_n=None):
    """Convenience path: f32 negatives (N, D); casts to bf16, precomputes
    norms, pads to a tile multiple and calls the kernel."""
    feat_q = feat_q.astype(jnp.float32)
    feat_k = feat_k.astype(jnp.float32)
    negatives = negatives.astype(jnp.float32)
    N, D = negatives.shape

    tn = _pick_tile_n(N, D, tile_n)
    n_pad = ((N + tn - 1) // tn) * tn
    norms = jnp.sqrt(jnp.sum(negatives * negatives, axis=-1))[None, :]  # (1, N)
    neg_bf = negatives.astype(jnp.bfloat16)
    if n_pad != N:
        neg_bf = jnp.pad(neg_bf, ((0, n_pad - N), (0, 0)))
        norms = jnp.pad(norms, ((0, 0), (0, n_pad - N)), constant_values=1.0)
    return _moco_loss_padded(feat_q, feat_k, neg_bf, norms,
                             jnp.asarray(N, jnp.int32), float(temperature), tn)


class MocoLossList:
    """JAX/Pallas port of the PyTorch MocoLoss_list module (forward pass).

    The negatives queue is a fixed-capacity device circular buffer of bf16
    rows (+ precomputed f32 norms), so the steady-state kernel compiles once
    and no host-side concatenate / pad / astype copies are made per call.
    """

    def __init__(self, temperature=0.07, use_queue=True,
                 queue_capacity_batches=512, tile_n=None):
        self.temperature = temperature
        self.use_queue = use_queue
        self.queue_capacity_batches = queue_capacity_batches
        self.idx_list = []
        self._tile_n = tile_n
        self._buf = None        # (alloc_rows, D) bf16 circular buffer
        self._norms = None      # (1, alloc_rows) f32 precomputed row norms
        self._cap_rows = 0      # logical capacity (rows)
        self._tile_rows = None
        self._count = 0         # number of valid rows currently in the queue
        self._pos = 0           # next write row

    def _enqueue(self, feat_k_f32):
        B, D = feat_k_f32.shape
        if self._buf is None:
            self._cap_rows = self.queue_capacity_batches * B
            self._tile_rows = _pick_tile_n(self._cap_rows, D, self._tile_n)
            alloc = ((self._cap_rows + self._tile_rows - 1)
                     // self._tile_rows) * self._tile_rows
            self._buf = jnp.zeros((alloc, D), dtype=jnp.bfloat16)
            self._norms = jnp.ones((1, alloc), dtype=jnp.float32)
        row = jnp.asarray(self._pos, dtype=jnp.int32)
        zero = jnp.asarray(0, dtype=jnp.int32)
        self._buf = lax.dynamic_update_slice(
            self._buf, feat_k_f32.astype(jnp.bfloat16), (row, zero))
        nrm = jnp.sqrt(jnp.sum(feat_k_f32 * feat_k_f32, axis=-1))[None, :]
        self._norms = lax.dynamic_update_slice(self._norms, nrm, (zero, row))
        self._pos = (self._pos + B) % self._cap_rows
        self._count = min(self._count + B, self._cap_rows)

    def __call__(self, feat_q, feat_k, idx):
        assert feat_q.shape == feat_k.shape, (feat_q.shape, feat_k.shape)
        batch_size = feat_q.shape[0]
        feat_q = feat_q.reshape(batch_size, -1).astype(jnp.float32)
        feat_k = lax.stop_gradient(
            feat_k.reshape(batch_size, -1)).astype(jnp.float32)

        if self._count == 0 or not self.use_queue:
            # PyTorch K == 0 branch: negatives are feat_k itself.
            loss = moco_logits_loss(feat_q, feat_k, feat_k, self.temperature,
                                    tile_n=self._tile_n)
        else:
            loss = _moco_loss_padded(
                feat_q, feat_k, self._buf, self._norms,
                jnp.asarray(self._count, jnp.int32),
                float(self.temperature), self._tile_rows)

        if self.use_queue:
            self._enqueue(feat_k)
        return loss


def _reference_loss(q, k, neg, temperature):
    """Pure-JAX f32 reference matching the PyTorch forward."""
    def cos(a, b):
        num = jnp.sum(a * b, axis=-1)
        den = jnp.maximum(
            jnp.sqrt(jnp.sum(a * a, axis=-1)) * jnp.sqrt(jnp.sum(b * b, axis=-1)),
            _EPS,
        )
        return num / den

    l_pos = cos(q, k)[:, None]
    l_neg = cos(q[:, None, :], neg[None, :, :])
    logits = jnp.concatenate([l_pos, l_neg], axis=1) / temperature
    return jnp.mean(jax.nn.logsumexp(logits, axis=-1) - logits[:, 0])


if __name__ == "__main__":
    key = jax.random.PRNGKey(0)
    k1, k2, k3, k4, k5, k6, k7 = jax.random.split(key, 7)

    B, C, H, W = 2, 4, 16, 16          # small NCHW feature maps, D = 1024
    D = C * H * W

    feat_q1 = jax.random.normal(k1, (B, C, H, W), dtype=jnp.float32)
    feat_k1 = jax.random.normal(k2, (B, C, H, W), dtype=jnp.float32)
    feat_q2 = jax.random.normal(k3, (B, C, H, W), dtype=jnp.float32)
    feat_k2 = jax.random.normal(k4, (B, C, H, W), dtype=jnp.float32)
    feat_q3 = jax.random.normal(k5, (B, C, H, W), dtype=jnp.float32)
    feat_k3 = jax.random.normal(k6, (B, C, H, W), dtype=jnp.float32)
    idx = jnp.arange(B, dtype=jnp.int32)

    # bf16 negatives stream => loosen tolerances vs the f32 reference.
    RTOL, ATOL = 2e-2, 2e-2

    criterion = MocoLossList(temperature=0.07, use_queue=True,
                             queue_capacity_batches=8)

    # call 1: queue empty -> negatives = feat_k1 (PyTorch K == 0 branch)
    loss1 = jax.block_until_ready(criterion(feat_q1, feat_k1, idx))
    ref1 = jax.block_until_ready(_reference_loss(
        feat_q1.reshape(B, -1), feat_k1.reshape(B, -1),
        feat_k1.reshape(B, -1), 0.07))
    assert jnp.allclose(loss1, ref1, rtol=RTOL, atol=ATOL), (loss1, ref1)

    # call 2: negatives come from the circular buffer (= feat_k1)
    loss2 = jax.block_until_ready(criterion(feat_q2, feat_k2, idx))
    ref2 = jax.block_until_ready(_reference_loss(
        feat_q2.reshape(B, -1), feat_k2.reshape(B, -1),
        feat_k1.reshape(B, -1), 0.07))
    assert jnp.allclose(loss2, ref2, rtol=RTOL, atol=ATOL), (loss2, ref2)

    # call 3: buffer holds feat_k1 + feat_k2, rest of capacity masked out
    loss3 = jax.block_until_ready(criterion(feat_q3, feat_k3, idx))
    ref3 = jax.block_until_ready(_reference_loss(
        feat_q3.reshape(B, -1), feat_k3.reshape(B, -1),
        jnp.concatenate([feat_k1.reshape(B, -1), feat_k2.reshape(B, -1)], 0),
        0.07))
    assert jnp.allclose(loss3, ref3, rtol=RTOL, atol=ATOL), (loss3, ref3)

    # multi-tile + padding/masking path: 300 negatives streamed as 3x128 tiles
    neg_big = jax.random.normal(k7, (300, D), dtype=jnp.float32)
    q_flat = feat_q1.reshape(B, -1)
    k_flat = feat_k1.reshape(B, -1)
    loss4 = jax.block_until_ready(
        moco_logits_loss(q_flat, k_flat, neg_big, 0.07, tile_n=128))
    ref4 = jax.block_until_ready(_reference_loss(q_flat, k_flat, neg_big, 0.07))
    assert jnp.allclose(loss4, ref4, rtol=RTOL, atol=ATOL), (loss4, ref4)

    print("KERNEL_OK")
</pallas_src>

<mosaic_0001>
module attributes {stable_mosaic.version = 11 : i64} {
  func.func @kernel(%arg0: i32, %arg1: memref<1xi32, #tpu.memory_space<smem>>, %arg2: memref<2x1024xf32, #tpu.memory_space<vmem>>, %arg3: memref<2x1024xf32, #tpu.memory_space<vmem>>, %arg4: memref<128x1024xbf16, #tpu.memory_space<vmem>>, %arg5: memref<1x128xf32, #tpu.memory_space<vmem>>, %arg6: memref<1x1xf32, #tpu.memory_space<vmem>>, %arg7: memref<2x1xf32, #tpu.memory_space<vmem>>, %arg8: memref<2x1xf32, #tpu.memory_space<vmem>>, %arg9: memref<2x1xf32, #tpu.memory_space<vmem>>) attributes {dimension_semantics = [#tpu.dimension_semantics<arbitrary>], iteration_bounds = array<i64: 1>, scalar_prefetch = 1 : i64, scratch_operands = 3 : i64, tpu.core_type = #tpu.core_type<tc>, window_params = [{pipeline_mode = #tpu.pipeline_mode<synchronous>, transform_indices = @transform_0, window_bounds = array<i64: 2, 1024>}, {pipeline_mode = #tpu.pipeline_mode<synchronous>, transform_indices = @transform_1, window_bounds = array<i64: 2, 1024>}, {transform_indices = @transform_2, window_bounds = array<i64: 128, 1024>}, {transform_indices = @transform_3, window_bounds = array<i64: 1, 128>}, {pipeline_mode = #tpu.pipeline_mode<synchronous>, transform_indices = @transform_4, window_bounds = array<i64: 1, 1>}]} {
    %c0_i32 = arith.constant 0 : i32
    %0 = arith.cmpi eq, %arg0, %c0_i32 : i32
    %1 = arith.extui %0 : i1 to i32
    %c0_i32_0 = arith.constant 0 : i32
    %2 = arith.cmpi ne, %1, %c0_i32_0 : i32
    scf.if %2 {
      %cst_25 = arith.constant 0xFF800000 : f32
      %49 = vector.broadcast %cst_25 : f32 to vector<2x1xf32>
      %c0_26 = arith.constant 0 : index
      %c0_27 = arith.constant 0 : index
      %50 = vector.load %arg7[%c0_26, %c0_27] : memref<2x1xf32, #tpu.memory_space<vmem>>, vector<2x1xf32>
      tpu.vector_store %arg7[%c0_26, %c0_27], %49 {strides = array<i32>} : memref<2x1xf32, #tpu.memory_space<vmem>>, vector<2x1xf32>,
      %cst_28 = arith.constant 0.000000e+00 : f32
      %51 = vector.broadcast %cst_28 : f32 to vector<2x1xf32>
      %c0_29 = arith.constant 0 : index
      %c0_30 = arith.constant 0 : index
      %52 = vector.load %arg8[%c0_29, %c0_30] : memref<2x1xf32, #tpu.memory_space<vmem>>, vector<2x1xf32>
      tpu.vector_store %arg8[%c0_29, %c0_30], %51 {strides = array<i32>} : memref<2x1xf32, #tpu.memory_space<vmem>>, vector<2x1xf32>,
      %c0_31 = arith.constant 0 : index
      %c0_32 = arith.constant 0 : index
      %53 = vector.load %arg2[%c0_31, %c0_32] : memref<2x1024xf32, #tpu.memory_space<vmem>>, vector<2x1024xf32>
      %54 = arith.mulf %53, %53 : vector<2x1024xf32>
      %cst_33 = arith.constant dense<0.000000e+00> : vector<2xf32>
      %55 = vector.multi_reduction <add>, %54, %cst_33 [1] : vector<2x1024xf32> to vector<2xf32>
      %56 = vector.shape_cast %55 : vector<2xf32> to vector<2x1xf32>
      %57 = math.sqrt %56 : vector<2x1xf32>
      %c0_34 = arith.constant 0 : index
      %c0_35 = arith.constant 0 : index
      %58 = vector.load %arg9[%c0_34, %c0_35] : memref<2x1xf32, #tpu.memory_space<vmem>>, vector<2x1xf32>
      tpu.vector_store %arg9[%c0_34, %c0_35], %57 {strides = array<i32>} : memref<2x1xf32, #tpu.memory_space<vmem>>, vector<2x1xf32>,
    } else {
    }
    %c0 = arith.constant 0 : index
    %c0_1 = arith.constant 0 : index
    %3 = vector.load %arg2[%c0, %c0_1] : memref<2x1024xf32, #tpu.memory_space<vmem>>, vector<2x1024xf32>
    %4 = arith.truncf %3 : vector<2x1024xf32> to vector<2x1024xbf16>
    %c0_2 = arith.constant 0 : index
    %c0_3 = arith.constant 0 : index
    %5 = vector.load %arg4[%c0_2, %c0_3] : memref<128x1024xbf16, #tpu.memory_space<vmem>>, vector<128x1024xbf16>
    %cst = arith.constant dense<0.000000e+00> : vector<2x128xf32>
    %6 = tpu.matmul %4, %5, %cst {dimension_numbers = #tpu.dot_dimension_numbers<[1], [1], [0], [0], [0, 0, 1, 0], [], []>} : vector<2x1024xbf16>, vector<128x1024xbf16>, vector<2x128xf32> -> vector<2x128xf32>
    %c0_4 = arith.constant 0 : index
    %c0_5 = arith.constant 0 : index
    %7 = vector.load %arg5[%c0_4, %c0_5] : memref<1x128xf32, #tpu.memory_space<vmem>>, vector<1x128xf32>
    %c0_6 = arith.constant 0 : index
    %c0_7 = arith.constant 0 : index
    %8 = vector.load %arg9[%c0_6, %c0_7] : memref<2x1xf32, #tpu.memory_space<vmem>>, vector<2x1xf32>
    %9 = vector.broadcast %8 : vector<2x1xf32> to vector<2x128xf32>
    %10 = vector.broadcast %7 : vector<1x128xf32> to vector<2x128xf32>
    %11 = arith.mulf %9, %10 : vector<2x128xf32>
    %cst_8 = arith.constant 9.99999993E-9 : f32
    %12 = vector.broadcast %cst_8 : f32 to vector<2x128xf32>
    %13 = arith.maximumf %11, %12 : vector<2x128xf32>
    %14 = tpu.reciprocal %13 {approx = true} : vector<2x128xf32> -> vector<2x128xf32>
    %cst_9 = arith.constant 14.2857141 : f32
    %15 = vector.broadcast %cst_9 : f32 to vector<2x128xf32>
    %16 = arith.mulf %15, %14 : vector<2x128xf32>
    %17 = arith.mulf %6, %16 : vector<2x128xf32>
    %18 = tpu.iota {dimensions = array<i32: 1>} : vector<1x128xi32>
    %c128_i32 = arith.constant 128 : i32
    %19 = arith.muli %arg0, %c128_i32 : i32
    %20 = vector.broadcast %19 : i32 to vector<1x128xi32>
    %21 = arith.addi %18, %20 : vector<1x128xi32>
    %c0_10 = arith.constant 0 : index
    %22 = memref.load %arg1[%c0_10] : memref<1xi32, #tpu.memory_space<smem>>
    %23 = vector.broadcast %22 : i32 to vector<1x128xi32>
    %24 = arith.cmpi slt, %21, %23 : vector<1x128xi32>
    %cst_11 = arith.constant 0.000000e+00 : f32
    %cst_12 = arith.constant -1.000000e+30 : f32
    %25 = vector.broadcast %cst_11 : f32 to vector<1x128xf32>
    %26 = vector.broadcast %cst_12 : f32 to vector<1x128xf32>
    %27 = arith.select %24, %25, %26 : vector<1x128xi1>, vector<1x128xf32>
    %28 = vector.broadcast %27 : vector<1x128xf32> to vector<2x128xf32>
    %29 = arith.addf %17, %28 : vector<2x128xf32>
    %c0_13 = arith.constant 0 : index
    %c0_14 = arith.constant 0 : index
    %30 = vector.load %arg7[%c0_13, %c0_14] : memref<2x1xf32, #tpu.memory_space<vmem>>, vector<2x1xf32>
    %cst_15 = arith.constant dense<0xFF800000> : vector<2xf32>
    %31 = vector.multi_reduction <maximumf>, %29, %cst_15 [1] : vector<2x128xf32> to vector<2xf32>
    %32 = vector.shape_cast %31 : vector<2xf32> to vector<2x1xf32>
    %33 = arith.maximumf %30, %32 : vector<2x1xf32>
    %34 = arith.subf %30, %33 : vector<2x1xf32>
    %35 = math.exp %34 : vector<2x1xf32>
    %c0_16 = arith.constant 0 : index
    %c0_17 = arith.constant 0 : index
    %36 = vector.load %arg8[%c0_16, %c0_17] : memref<2x1xf32, #tpu.memory_space<vmem>>, vector<2x1xf32>
    %37 = arith.mulf %35, %36 : vector<2x1xf32>
    %38 = vector.broadcast %33 : vector<2x1xf32> to vector<2x128xf32>
    %39 = arith.subf %29, %38 : vector<2x128xf32>
    %40 = math.exp %39 : vector<2x128xf32>
    %cst_18 = arith.constant dense<0.000000e+00> : vector<2xf32>
    %41 = vector.multi_reduction <add>, %40, %cst_18 [1] : vector<2x128xf32> to vector<2xf32>
    %42 = vector.shape_cast %41 : vector<2xf32> to vector<2x1xf32>
    %43 = arith.addf %37, %42 : vector<2x1xf32>
    %c0_19 = arith.constant 0 : index
    %c0_20 = arith.constant 0 : index
    %44 = vector.load %arg8[%c0_19, %c0_20] : memref<2x1xf32, #tpu.memory_space<vmem>>, vector<2x1xf32>
    tpu.vector_store %arg8[%c0_19, %c0_20], %43 {strides = array<i32>} : memref<2x1xf32, #tpu.memory_space<vmem>>, vector<2x1xf32>,
    %c0_21 = arith.constant 0 : index
    %c0_22 = arith.constant 0 : index
    %45 = vector.load %arg7[%c0_21, %c0_22] : memref<2x1xf32, #tpu.memory_space<vmem>>, vector<2x1xf32>
    tpu.vector_store %arg7[%c0_21, %c0_22], %33 {strides = array<i32>} : memref<2x1xf32, #tpu.memory_space<vmem>>, vector<2x1xf32>,
    %c0_i32_23 = arith.constant 0 : i32
    %46 = arith.cmpi eq, %arg0, %c0_i32_23 : i32
    %47 = arith.extui %46 : i1 to i32
    %c0_i32_24 = arith.constant 0 : i32
    %48 = arith.cmpi ne, %47, %c0_i32_24 : i32
    scf.if %48 {
      %c0_25 = arith.constant 0 : index
      %c0_26 = arith.constant 0 : index
      %49 = vector.load %arg2[%c0_25, %c0_26] : memref<2x1024xf32, #tpu.memory_space<vmem>>, vector<2x1024xf32>
      %c0_27 = arith.constant 0 : index
      %c0_28 = arith.constant 0 : index
      %50 = vector.load %arg3[%c0_27, %c0_28] : memref<2x1024xf32, #tpu.memory_space<vmem>>, vector<2x1024xf32>
      %c0_29 = arith.constant 0 : index
      %c0_30 = arith.constant 0 : index
      %51 = vector.load %arg9[%c0_29, %c0_30] : memref<2x1xf32, #tpu.memory_space<vmem>>, vector<2x1xf32>
      %52 = arith.mulf %49, %50 : vector<2x1024xf32>
      %cst_31 = arith.constant dense<0.000000e+00> : vector<2xf32>
      %53 = vector.multi_reduction <add>, %52, %cst_31 [1] : vector<2x1024xf32> to vector<2xf32>
      %54 = vector.shape_cast %53 : vector<2xf32> to vector<2x1xf32>
      %55 = arith.mulf %50, %50 : vector<2x1024xf32>
      %cst_32 = arith.constant dense<0.000000e+00> : vector<2xf32>
      %56 = vector.multi_reduction <add>, %55, %cst_32 [1] : vector<2x1024xf32> to vector<2xf32>
      %57 = vector.shape_cast %56 : vector<2xf32> to vector<2x1xf32>
      %58 = math.sqrt %57 : vector<2x1xf32>
      %59 = arith.mulf %51, %58 : vector<2x1xf32>
      %cst_33 = arith.constant 9.99999993E-9 : f32
      %60 = vector.broadcast %cst_33 : f32 to vector<2x1xf32>
      %61 = arith.maximumf %59, %60 : vector<2x1xf32>
      %62 = arith.divf %54, %61 : vector<2x1xf32>
      %cst_34 = arith.constant 14.2857141 : f32
      %63 = vector.broadcast %cst_34 : f32 to vector<2x1xf32>
      %64 = arith.mulf %62, %63 : vector<2x1xf32>
      %c0_35 = arith.constant 0 : index
      %c0_36 = arith.constant 0 : index
      %65 = vector.load %arg7[%c0_35, %c0_36] : memref<2x1xf32, #tpu.memory_space<vmem>>, vector<2x1xf32>
      %c0_37 = arith.constant 0 : index
      %c0_38 = arith.constant 0 : index
      %66 = vector.load %arg8[%c0_37, %c0_38] : memref<2x1xf32, #tpu.memory_space<vmem>>, vector<2x1xf32>
      %67 = math.log %66 : vector<2x1xf32>
      %68 = arith.addf %65, %67 : vector<2x1xf32>
      %69 = arith.maximumf %68, %64 : vector<2x1xf32>
      %70 = arith.subf %68, %69 : vector<2x1xf32>
      %71 = math.exp %70 : vector<2x1xf32>
      %72 = arith.subf %64, %69 : vector<2x1xf32>
      %73 = math.exp %72 : vector<2x1xf32>
      %74 = arith.addf %71, %73 : vector<2x1xf32>
      %75 = math.log %74 : vector<2x1xf32>
      %76 = arith.addf %69, %75 : vector<2x1xf32>
      %77 = arith.subf %76, %64 : vector<2x1xf32>
      %cst_39 = arith.constant dense<0.000000e+00> : vector<1xf32>
      %78 = vector.multi_reduction <add>, %77, %cst_39 [0] : vector<2x1xf32> to vector<1xf32>
      %79 = vector.shape_cast %78 : vector<1xf32> to vector<1x1xf32>
      %cst_40 = arith.constant 5.000000e-01 : f32
      %80 = vector.broadcast %cst_40 : f32 to vector<1x1xf32>
      %81 = arith.mulf %79, %80 : vector<1x1xf32>
      %c0_41 = arith.constant 0 : index
      %c0_42 = arith.constant 0 : index
      %82 = vector.load %arg6[%c0_41, %c0_42] : memref<1x1xf32, #tpu.memory_space<vmem>>, vector<1x1xf32>
      tpu.vector_store %arg6[%c0_41, %c0_42], %81 {strides = array<i32>} : memref<1x1xf32, #tpu.memory_space<vmem>>, vector<1x1xf32>,
    } else {
    }
    return
  }
  func.func @transform_0(%arg0: i32, %arg1: memref<1xi32, #tpu.memory_space<smem>>) -> (i32, i32) {
    %c0_i32 = arith.constant 0 : i32
    %c0_i32_0 = arith.constant 0 : i32
    %c0_i32_1 = arith.constant 0 : i32
    return %c0_i32, %c0_i32_0 : i32, i32
  }
  func.func @transform_1(%arg0: i32, %arg1: memref<1xi32, #tpu.memory_space<smem>>) -> (i32, i32) {
    %c0_i32 = arith.constant 0 : i32
    %c0_i32_0 = arith.constant 0 : i32
    %c0_i32_1 = arith.constant 0 : i32
    return %c0_i32, %c0_i32_0 : i32, i32
  }
  func.func @transform_2(%arg0: i32, %arg1: memref<1xi32, #tpu.memory_space<smem>>) -> (i32, i32) {
    %c0_i32 = arith.constant 0 : i32
    %c0_i32_0 = arith.constant 0 : i32
    return %arg0, %c0_i32 : i32, i32
  }
  func.func @transform_3(%arg0: i32, %arg1: memref<1xi32, #tpu.memory_space<smem>>) -> (i32, i32) {
    %c0_i32 = arith.constant 0 : i32
    %c0_i32_0 = arith.constant 0 : i32
    return %c0_i32, %arg0 : i32, i32
  }
  func.func @transform_4(%arg0: i32, %arg1: memref<1xi32, #tpu.memory_space<smem>>) -> (i32, i32) {
    %c0_i32 = arith.constant 0 : i32
    %c0_i32_0 = arith.constant 0 : i32
    %c0_i32_1 = arith.constant 0 : i32
    return %c0_i32, %c0_i32_0 : i32, i32
  }
}

</mosaic_0001>

<bundles_post_ra>
// kernel: _moco_loss_padded.1
= control target key start
LH: loop header
LB: loop body
LE: loop exit
PB: predicated region body
PF: predicated region fallthrough
CT: control target
= control target key end

     0   :  { %11 = vsyncpa [#allocation8], 0  ;;  %s1386_s0 = inlined_call_operand.<no memory space> [shape: s32[1], index: 0, kind: input, shape index: {}]   ;;  %s1387_s1 = inlined_call_operand.hbm [shape: f32[2,1024], index: 1, kind: input, shape index: {}]   ;;  %s1388_s2 = inlined_call_operand.hbm [shape: f32[2,1024], index: 2, kind: input, shape index: {}]   ;;  %s1389_s3 = inlined_call_operand.hbm [shape: bf16[128,1024], index: 3, kind: input, shape index: {}]   ;;  %s1390_s4 = inlined_call_operand.vmem [shape: f32[1,128], index: 4, kind: input, shape index: {}]   ;;  %s1391_s5 = inlined_call_operand.hbm [shape: f32[1,1], index: 5, kind: output, shape index: {}]  }
   0x1   :  { %12 = vsyncpa [#allocation11], 0 }
   0x2   :  { %13 = vsyncpa [#allocation9], 0  ;;  %s1183_s18 = smov [#allocation10]   ;;  %s1184_s20 = smov [#allocation7]  }
   0x3   :  { %s30_s19 = sshll.u32 %s1183_s18, 4  ;;  %s20_s21 = sshll.u32 %s1184_s20, 4  ;;  %s31_s19 = int_to_ptr.vmem [resolvable:$true] %s30_s19  ;;  %s21_s21 = int_to_ptr.vmem [resolvable:$true] %s20_s21 }
   0x4   :  { %s1089_s24 = scalar_lea.hbm %s1388_s2, 256 }
   0x5   :  { %p1090_p0 = scmp.ne.s32.totalorder %s1388_s2, %s1089_s24  ;;  %p1093_p1 = scmp.lt.u32.totalorder %s1089_s24, %s1388_s2 }
   0x7   :  { %p1095_p2 = pnand %p1093_p1, %p1090_p0 }
   0x9   :  { %1098 = shalt.err (!%p1095_p2)
}
   0xa   :  { %s1099_s29 = scalar_lea.vmem %s31_s19, 256  ;;  %p1104_p4 = scmp.lt.s32.totalorder %s31_s19, %s31_s19 }
   0xb   :  { %p1100_p3 = scmp.ne.s32.totalorder %s31_s19, %s1099_s29  ;;  %p1105_p5 = scmp.lt.s32.totalorder %s1099_s29, %s1099_s29 }
   0xd   :  { %p1106_p6 = por %p1105_p5, %p1104_p4 }
   0xf   :  { %p1107_p7 = pnand %p1106_p6, %p1100_p3 }
  0x11   :  { %1110 = shalt.err (!%p1107_p7)
}
  0x12   :  { %33 = dma.hbm_to_vmem [thread:$0]  %s1388_s2, 256, %s31_s19, [#allocation11]  }
  0x13   :  { %s1111_s9 = scalar_lea.hbm %s1387_s1, 256 }
  0x14   :  { %p1112_p8 = scmp.ne.s32.totalorder %s1387_s1, %s1111_s9  ;;  %p1115_p9 = scmp.lt.u32.totalorder %s1111_s9, %s1387_s1 }
  0x16   :  { %p1117_p10 = pnand %p1115_p9, %p1112_p8 }
  0x18   :  { %1120 = shalt.err (!%p1117_p10)
}
  0x19   :  { %s1121_s14 = scalar_lea.vmem %s21_s21, 256  ;;  %p1126_p12 = scmp.lt.s32.totalorder %s21_s21, %s21_s21 }
  0x1a   :  { %p1122_p11 = scmp.ne.s32.totalorder %s21_s21, %s1121_s14  ;;  %p1127_p13 = scmp.lt.s32.totalorder %s1121_s14, %s1121_s14 }
  0x1c   :  { %p1128_p0 = por %p1127_p13, %p1126_p12 }
  0x1e   :  { %p1129_p1 = pnand %p1128_p0, %p1122_p11 }
  0x20   :  { %1132 = shalt.err (!%p1129_p1)
}
  0x21   :  { %23 = dma.hbm_to_vmem [thread:$0]  %s1387_s1, 256, %s21_s21, [#allocation8]  }
  0x22   :  { %s1185_s16 = smov [#allocation12]   ;;  %s1133_s20 = scalar_lea.hbm %s1389_s3, 8192 }
  0x23   :  { %s39_s17 = sshll.u32 %s1185_s16, 4  ;;  %p1134_p2 = scmp.ne.s32.totalorder %s1389_s3, %s1133_s20  ;;  %s40_s17 = int_to_ptr.vmem [resolvable:$true] %s39_s17 }
  0x24   :  { %p1137_p3 = scmp.lt.u32.totalorder %s1133_s20, %s1389_s3 }
  0x26   :  { %p1139_p4 = pnand %p1137_p3, %p1134_p2 }
  0x28   :  { %1142 = shalt.err (!%p1139_p4)
}
  0x29   :  { %s1143_s26 = scalar_lea.vmem %s40_s17, 8192  ;;  %p1148_p6 = scmp.lt.s32.totalorder %s40_s17, %s40_s17 }
  0x2a   :  { %p1144_p5 = scmp.ne.s32.totalorder %s40_s17, %s1143_s26  ;;  %p1149_p7 = scmp.lt.s32.totalorder %s1143_s26, %s1143_s26 }
  0x2c   :  { %p1150_p8 = por %p1149_p7, %p1148_p6 }
  0x2e   :  { %p1151_p9 = pnand %p1150_p8, %p1144_p5 }
  0x30   :  { %1154 = shalt.err (!%p1151_p9)
}
  0x31   :  { %s1186_s1 = smov 512   ;;  %s1187_s21 = smov 32  }
  0x32   :  { %45 = dma.hbm_to_vmem [thread:$0]  %s1389_s3, 8192, %s40_s17, [#allocation11], %s1186_s1, %s1186_s1, %s1187_s21  }
  0x33   :  { %1177 = dma.done.wait [#allocation8], 256  }
  0x34   :  { %1178 = vsyncadd [#allocation8], 4294967040 }
  0x35   :  { %1179 = dma.done.wait [#allocation11], 8448  }
  0x36   :  { %1180 = vsyncadd [#allocation11], 4294958848  ;;  %v1188_v0 = vmov 1983009808   ;;  %v75_v2 = vlaneseq  ;;  %v193_v5 = vld [vmem:[#allocation12] sm:$0xff]  ;;  %v195_v7 = vld [vmem:[#allocation12 + $0x10] sm:$0xff] }
  0x37   :  { %v73_v1 = vunpack.c.l.s4 %v1188_v0  ;;  %v197_v6 = vld [vmem:[#allocation12 + $0x20] sm:$0xff]  ;;  %v199_v9 = vld [vmem:[#allocation12 + $0x30] sm:$0xff]  ;;  %v1265_v21 = vld [vmem:[#allocation7 + $0x8] sm:$0xff]  ;;  %vm113_vm0 = vcmask 1041408   ;;  %vm62_vm3 = vcmask 1024   ;;  %vm962_vm7 = vcmask 0  }
  0x38   :  { %v76_v4 = vshrl.u32 %v75_v2, 7  ;;  %v981_v8 = vcombine.high %v193_v5, %v197_v6  ;;  %v980_v10 = vcombine.low %v193_v5, %v197_v6  ;;  %v201_v11 = vld [vmem:[#allocation12 + $0x40] sm:$0xff]  ;;  %v985_v13 = vcombine.high %v195_v7, %v199_v9  ;;  %v203_v16 = vld [vmem:[#allocation12 + $0x50] sm:$0xff] }
  0x39   :  { %v74_v3 = vunpack.c.0.s8 %v73_v1  ;;  %v205_v12 = vld [vmem:[#allocation12 + $0x60] sm:$0xff]  ;;  %v984_v14 = vcombine.low %v195_v7, %v199_v9  ;;  %v207_v17 = vld [vmem:[#allocation12 + $0x70] sm:$0xff]  ;;  %v68_v25 = vmul.f32 %v1265_v21, %v1265_v21 }
  0x3a   :  { %v989_v15 = vcombine.high %v201_v11, %v205_v12  ;;  %577 = vmatprep.subr.bf16.mxu1 %v981_v8  ;;  %v993_v18 = vcombine.high %v203_v16, %v207_v17  ;;  %657 = vmatprep.subr.bf16.mxu0 %v985_v13  ;;  %v1263_v20 = vld [vmem:[#allocation7] sm:$0xff]  ;;  %v211_v26 = vld [vmem:[#allocation12 + $0x90] sm:$0xff]  ;;  %v988_v30 = vcombine.low %v201_v11, %v205_v12 }
  0x3b   :  { %v1261_v19 = vsub.s32 %v74_v3, %v76_v4  ;;  %578 = vmatpush1.bf16.xpose.msra.mxu1 %v980_v10  ;;  %658 = vmatpush1.bf16.xpose.msra.mxu0 %v984_v14  ;;  %v209_v22 = vld [vmem:[#allocation12 + $0x80] sm:$0xff]  ;;  %v67_v24 = vmul.f32 %v1263_v20, %v1263_v20  ;;  %v215_v27 = vld [vmem:[#allocation12 + $0xb0] sm:$0xff]  ;;  %v992_v31 = vcombine.low %v203_v16, %v207_v17 }
  0x3c   :  { %579 = vmatprep.subr.bf16.mxu1 %v989_v15  ;;  %v213_v23 = vld [vmem:[#allocation12 + $0xa0] sm:$0xff]  ;;  %659 = vmatprep.subr.bf16.mxu0 %v993_v18  ;;  %v88_v35 = vcombine.high %v68_v25, %v68_v25  ;;  %v1001_v37 = vcombine.high %v211_v26, %v215_v27  ;;  %v219_v50 = vld [vmem:[#allocation12 + $0xd0] sm:$0xff]  ;;  %v1000_v53 = vcombine.low %v211_v26, %v215_v27 }
  0x3d   :  { %v71_v28 = vcombine.high %v67_v24, %v67_v24  ;;  %v78_v29 = vrot.slane %v67_v24, %v1261_v19  ;;  %v997_v32 = vcombine.high %v209_v22, %v213_v23  ;;  %v95_v36 = vrot.slane %v68_v25, %v1261_v19  ;;  %v217_v47 = vld [vmem:[#allocation12 + $0xc0] sm:$0xff]  ;;  %v223_v51 = vld [vmem:[#allocation12 + $0xf0] sm:$0xff] }
  0x3e   :  { %v102_v43 = vrot.slane %v88_v35, %v1261_v19  ;;  %v221_v48 = vld [vmem:[#allocation12 + $0xe0] sm:$0xff]  ;;  %v996_v52 = vcombine.low %v209_v22, %v213_v23  ;;  %v1282_v55 = vrot.slane %v1263_v20, %v1261_v19  ;;  %v1287_v59 = vrot.slane %v1265_v21, %v1261_v19  ;;  %v227_v9 = vld [vmem:[#allocation12 + $0x110] sm:$0xff] }
  0x3f   :  { %v85_v33 = vrot.slane %v71_v28, %v1261_v19  ;;  %v86_v34 = vcombine.high %v78_v29, %v78_v29  ;;  %v114_v38 = vsel %vm113_vm0, %v78_v29, 0.0  ;;  %v103_v44 = vcombine.high %v95_v36, %v95_v36  ;;  %v225_v7 = vld [vmem:[#allocation12 + $0x100] sm:$0xff]  ;;  %v231_v10 = vld [vmem:[#allocation12 + $0x130] sm:$0xff] }
  0x40   :  { %v121_v49 = vsel %vm113_vm0, %v95_v36, 0.0  ;;  %v104_v56 = vcombine.high %v102_v43, %v102_v43  ;;  %v1005_v58 = vcombine.high %v217_v47, %v221_v48  ;;  %v1009_v61 = vcombine.high %v219_v50, %v223_v51  ;;  %v229_v8 = vld [vmem:[#allocation12 + $0x120] sm:$0xff]  ;;  %v235_v18 = vld [vmem:[#allocation12 + $0x150] sm:$0xff] }
  0x41   :  { %v87_v39 = vcombine.high %v85_v33, %v85_v33  ;;  %v115_v40 = vsel %vm113_vm0, %v86_v34, 0.0  ;;  %v117_v41 = vsel %vm113_vm0, %v85_v33, 0.0  ;;  %v123_v57 = vsel %vm113_vm0, %v103_v44, 0.0  ;;  %v233_v16 = vld [vmem:[#allocation12 + $0x140] sm:$0xff]  ;;  %v239_v22 = vld [vmem:[#allocation12 + $0x170] sm:$0xff]  ;;  %v194_v44 = vld [vmem:[#allocation12 + $0x8] sm:$0xff] }
  0x42   :  { %v116_v42 = vadd.f32 %v115_v40, %v114_v38  ;;  %v158_v62 = vcombine.high %v1282_v55, %v1282_v55  ;;  %v125_v63 = vsel %vm113_vm0, %v102_v43, 0.0  ;;  %v175_v0 = vcombine.high %v1287_v59, %v1287_v59  ;;  %v237_v17 = vld [vmem:[#allocation12 + $0x160] sm:$0xff]  ;;  %v243_v29 = vld [vmem:[#allocation12 + $0x190] sm:$0xff] }
  0x43   :  { %580 = vmatpush1.bf16.xpose.msra.mxu1 %v988_v30  ;;  %660 = vmatpush1.bf16.xpose.msra.mxu0 %v992_v31  ;;  %v119_v45 = vsel %vm113_vm0, %v87_v39, 0.0  ;;  %v127_v4 = vsel %vm113_vm0, %v104_v56, 0.0  ;;  %v1004_v12 = vcombine.low %v217_v47, %v221_v48  ;;  %v1008_v13 = vcombine.low %v219_v50, %v223_v51  ;;  %v241_v27 = vld [vmem:[#allocation12 + $0x180] sm:$0xff]  ;;  %v247_v30 = vld [vmem:[#allocation12 + $0x1b0] sm:$0xff]  ;;  %v196_v47 = vld [vmem:[#allocation12 + $0x18] sm:$0xff] }
  0x44   :  { %581 = vmatprep.subr.bf16.mxu1 %v997_v32  ;;  %661 = vmatprep.subr.bf16.mxu0 %v1001_v37  ;;  %v118_v46 = vadd.f32 %v117_v41, %v116_v42  ;;  %v186_v3 = vpack.c.bf16 %v158_v62, %v158_v62  ;;  %v190_v5 = vpack.c.bf16 %v175_v0, %v175_v0  ;;  %v245_v28 = vld [vmem:[#allocation12 + $0x1a0] sm:$0xff]  ;;  %v251_v37 = vld [vmem:[#allocation12 + $0x1d0] sm:$0xff]  ;;  %v200_v48 = vld [vmem:[#allocation12 + $0x38] sm:$0xff]  ;;  %v1189_v50 = vmov 0  }
  0x45   :  { %v1013_v14 = vcombine.high %v225_v7, %v229_v8  ;;  %v1017_v15 = vcombine.high %v227_v9, %v231_v10  ;;  %v1012_v23 = vcombine.low %v225_v7, %v229_v8  ;;  %v1016_v24 = vcombine.low %v227_v9, %v231_v10  ;;  %v249_v35 = vld [vmem:[#allocation12 + $0x1c0] sm:$0xff]  ;;  %v255_v38 = vld [vmem:[#allocation12 + $0x1f0] sm:$0xff]  ;;  %1065 = vset.pattern.permute.xlu0 %v1189_v50  ;;  %v204_v62 = vld [vmem:[#allocation12 + $0x58] sm:$0xff] }
  0x46   :  { %v120_v54 = vadd.f32 %v119_v45, %v118_v46  ;;  %609 = vmatprep.mubr.bf16.mxu1 %v186_v3  ;;  %689 = vmatprep.mubr.bf16.mxu0 %v190_v5  ;;  %v1021_v25 = vcombine.high %v233_v16, %v237_v17  ;;  %v1025_v26 = vcombine.high %v235_v18, %v239_v22  ;;  %v253_v36 = vld [vmem:[#allocation12 + $0x1e0] sm:$0xff]  ;;  %v198_v45 = vld [vmem:[#allocation12 + $0x28] sm:$0xff]  ;;  %v212_v10 = vld [vmem:[#allocation12 + $0x98] sm:$0xff] }
  0x47   :  { %v1020_v31 = vcombine.low %v233_v16, %v237_v17  ;;  %v1024_v32 = vcombine.low %v235_v18, %v239_v22  ;;  %v1029_v33 = vcombine.high %v241_v27, %v245_v28  ;;  %v1033_v34 = vcombine.high %v243_v29, %v247_v30  ;;  %1066 = vset.pattern.permute.xlu1 %v1189_v50  ;;  %v214_v9 = vld [vmem:[#allocation12 + $0xa8] sm:$0xff]  ;;  %v220_v17 = vld [vmem:[#allocation12 + $0xd8] sm:$0xff] }
  0x48   :  { %v122_v60 = vadd.f32 %v121_v49, %v120_v54  ;;  %v1028_v39 = vcombine.low %v241_v27, %v245_v28  ;;  %v1032_v40 = vcombine.low %v243_v29, %v247_v30  ;;  %v1037_v41 = vcombine.high %v249_v35, %v253_v36  ;;  %v222_v16 = vld [vmem:[#allocation12 + $0xe8] sm:$0xff]  ;;  %v224_v18 = vld [vmem:[#allocation12 + $0xf8] sm:$0xff] }
  0x49   :  { %v1041_v42 = vcombine.high %v251_v37, %v255_v38  ;;  %v143_v43 = vcombine.high %v1263_v20, %v1263_v20  ;;  %v160_v46 = vcombine.high %v1265_v21, %v1265_v21  ;;  %v1036_v49 = vcombine.low %v249_v35, %v253_v36  ;;  %v230_v27 = vld [vmem:[#allocation12 + $0x128] sm:$0xff]  ;;  %v228_v28 = vld [vmem:[#allocation12 + $0x118] sm:$0xff] }
  0x4a   :  { %v124_v1 = vadd.f32 %v123_v57, %v122_v60  ;;  %v1040_v51 = vcombine.low %v251_v37, %v255_v38  ;;  %v202_v57 = vld [vmem:[#allocation12 + $0x48] sm:$0xff]  ;;  %v189_v3 = vpack.c.bf16 %v1287_v59, %v1287_v59  ;;  %v232_v29 = vld [vmem:[#allocation12 + $0x138] sm:$0xff] }
  0x4b   :  { %582 = vmatpush1.bf16.xpose.msra.mxu1 %v996_v52  ;;  %662 = vmatpush1.bf16.xpose.msra.mxu0 %v1000_v53  ;;  %v983_v52 = vcombine.high %v194_v44, %v198_v45  ;;  %v987_v53 = vcombine.high %v196_v47, %v200_v48  ;;  %v1300_v54 = vrot.slane %v143_v43, %v1261_v19  ;;  %v238_v35 = vld [vmem:[#allocation12 + $0x168] sm:$0xff]  ;;  %v236_v36 = vld [vmem:[#allocation12 + $0x158] sm:$0xff] }
  0x4c   :  { %583 = vmatprep.subr.bf16.mxu1 %v1005_v58  ;;  %v126_v6 = vadd.f32 %v125_v63, %v124_v1  ;;  %663 = vmatprep.subr.bf16.mxu0 %v1009_v61  ;;  %v1303_v56 = vrot.slane %v160_v46, %v1261_v19  ;;  %v206_v58 = vld [vmem:[#allocation12 + $0x68] sm:$0xff]  ;;  %v185_v61 = vpack.c.bf16 %v1282_v55, %v1282_v55  ;;  %v208_v63 = vld [vmem:[#allocation12 + $0x78] sm:$0xff] }
  0x4d   :  { %v159_v60 = vcombine.high %v1300_v54, %v1300_v54  ;;  %v982_v1 = vcombine.low %v194_v44, %v198_v45  ;;  %v991_v5 = vcombine.high %v202_v57, %v206_v58  ;;  %v210_v55 = vld [vmem:[#allocation12 + $0x88] sm:$0xff]  ;;  %v240_v37 = vld [vmem:[#allocation12 + $0x178] sm:$0xff] }
  0x4e   :  { %v128_v11 = vadd.f32 %v127_v4, %v126_v6  ;;  %v176_v0 = vcombine.high %v1303_v56, %v1303_v56  ;;  %v986_v4 = vcombine.low %v196_v47, %v200_v48  ;;  %v995_v6 = vcombine.high %v204_v62, %v208_v63  ;;  %v246_v43 = vld [vmem:[#allocation12 + $0x1a8] sm:$0xff]  ;;  %v244_v44 = vld [vmem:[#allocation12 + $0x198] sm:$0xff] }
  0x4f   :  { %v188_v7 = vpack.c.bf16 %v159_v60, %v159_v60  ;;  %v999_v59 = vcombine.high %v210_v55, %v214_v9  ;;  %v998_v22 = vcombine.low %v210_v55, %v214_v9  ;;  %v248_v45 = vld [vmem:[#allocation12 + $0x1b8] sm:$0xff]  ;;  %v1026_v47 = vcombine.low %v236_v36, %v240_v37  ;;  %v250_v50 = vld [vmem:[#allocation12 + $0x1c8] sm:$0xff] }
  0x50   :  { %129 = vadd.xlane.f32.xlu0 %v128_v11  ;;  %v192_v8 = vpack.c.bf16 %v176_v0, %v176_v0  ;;  %v216_v11 = vld [vmem:[#allocation12 + $0xb8] sm:$0xff]  ;;  %v187_v0 = vpack.c.bf16 %v1300_v54, %v1300_v54  ;;  %v1190_v54 = vmov -inf  }
  0x51   :  { %63 = vst.msk [vmem:[#allocation2] sm:$0x3] %vm62_vm3, %v1190_v54 }
  0x53   :  { %584 = vmatpush1.bf16.xpose.msra.mxu1 %v1004_v12  ;;  %664 = vmatpush1.bf16.xpose.msra.mxu0 %v1008_v13  ;;  %v990_v12 = vcombine.low %v202_v57, %v206_v58  ;;  %v994_v13 = vcombine.low %v204_v62, %v208_v63  ;;  %v1034_v58 = vcombine.low %v244_v44, %v248_v45 }
  0x54   :  { %585 = vmatprep.subr.bf16.mxu1 %v1013_v14  ;;  %665 = vmatprep.subr.bf16.mxu0 %v1017_v15  ;;  %v1003_v14 = vcombine.high %v212_v10, %v216_v11  ;;  %v218_v15 = vld [vmem:[#allocation12 + $0xc8] sm:$0xff] }
  0x55   :  { %v1006_v30 = vcombine.low %v218_v15, %v222_v16 }
  0x5b   :  { %586 = vmatpush1.bf16.xpose.msra.mxu1 %v1012_v23  ;;  %666 = vmatpush1.bf16.xpose.msra.mxu0 %v1016_v24  ;;  %v1002_v23 = vcombine.low %v212_v10, %v216_v11  ;;  %v1007_v24 = vcombine.high %v218_v15, %v222_v16 }
  0x5c   :  { %587 = vmatprep.subr.bf16.mxu1 %v1021_v25  ;;  %667 = vmatprep.subr.bf16.mxu0 %v1025_v26  ;;  %v1011_v25 = vcombine.high %v220_v17, %v224_v18  ;;  %v226_v26 = vld [vmem:[#allocation12 + $0x108] sm:$0xff] }
  0x5d   :  { %v1014_v38 = vcombine.low %v226_v26, %v230_v27 }
  0x63   :  { %588 = vmatpush1.bf16.xpose.msra.mxu1 %v1020_v31  ;;  %668 = vmatpush1.bf16.xpose.msra.mxu0 %v1024_v32  ;;  %v1010_v31 = vcombine.low %v220_v17, %v224_v18  ;;  %v1015_v32 = vcombine.high %v226_v26, %v230_v27  ;;  %v1191_v26 = vmov -1e+30  }
  0x64   :  { %589 = vmatprep.subr.bf16.mxu1 %v1029_v33  ;;  %669 = vmatprep.subr.bf16.mxu0 %v1033_v34  ;;  %v1019_v33 = vcombine.high %v228_v28, %v232_v29  ;;  %v234_v34 = vld [vmem:[#allocation12 + $0x148] sm:$0xff] }
  0x65   :  { %v1022_v46 = vcombine.low %v234_v34, %v238_v35 }
  0x6b   :  { %590 = vmatpush1.bf16.xpose.msra.mxu1 %v1028_v39  ;;  %670 = vmatpush1.bf16.xpose.msra.mxu0 %v1032_v40  ;;  %v1018_v39 = vcombine.low %v228_v28, %v232_v29  ;;  %v1023_v40 = vcombine.high %v234_v34, %v238_v35  ;;  %v1331_v34 = vld [vmem:[#allocation2] sm:$0x3] }
  0x6c   :  { %591 = vmatprep.subr.bf16.mxu1 %v1037_v41  ;;  %671 = vmatprep.subr.bf16.mxu0 %v1041_v42  ;;  %v1027_v41 = vcombine.high %v236_v36, %v240_v37  ;;  %v242_v42 = vld [vmem:[#allocation12 + $0x188] sm:$0xff] }
  0x6d   :  { %v1031_v48 = vcombine.high %v242_v42, %v246_v43  ;;  %v1030_v57 = vcombine.low %v242_v42, %v246_v43 }
  0x73   :  { %592 = vmatpush1.bf16.xpose.msra.mxu1 %v1036_v49  ;;  %672 = vmatpush1.bf16.xpose.msra.mxu0 %v1040_v51  ;;  %v1035_v49 = vcombine.high %v244_v44, %v248_v45  ;;  %v254_v51 = vld [vmem:[#allocation12 + $0x1e8] sm:$0xff]  ;;  %v797_v44 = vld [vmem:[#allocation10 + $0x8] sm:$0xff] }
  0x74   :  { %617 = vmatprep.subr.bf16.mxu1 %v983_v52  ;;  %697 = vmatprep.subr.bf16.mxu0 %v987_v53  ;;  %v252_v52 = vld [vmem:[#allocation12 + $0x1d8] sm:$0xff]  ;;  %v1039_v60 = vcombine.high %v250_v50, %v254_v51  ;;  %v1038_v62 = vcombine.low %v250_v50, %v254_v51 }
  0x75   :  { %v256_v53 = vld [vmem:[#allocation12 + $0x1f8] sm:$0xff] }
  0x76   :  { %v1042_v63 = vcombine.low %v252_v52, %v256_v53 }
  0x7a   :  { %610 = vmatmul.mubr.bf16.vlgmr.msra.gmra.mrb[0].mxu1 %v185_v61  ;;  %690 = vmatmul.mubr.bf16.vlgmr.msra.gmra.mrb[0].mxu0 %v189_v3  ;;  %v1043_v61 = vcombine.high %v252_v52, %v256_v53 }
  0x7b   :  { %618 = vmatpush1.bf16.xpose.msra.mxu1 %v982_v1  ;;  %698 = vmatpush1.bf16.xpose.msra.mxu0 %v986_v4  ;;  %v191_v1 = vpack.c.bf16 %v1303_v56, %v1303_v56  ;;  %v1044_v56 = vld [vmem:[%s1390_s4] ss:$0 sm:$0xff] }
  0x7c   :  { %619 = vmatprep.subr.bf16.mxu1 %v991_v5  ;;  %699 = vmatprep.subr.bf16.mxu0 %v995_v6 }
  0x7d   :  { %649 = vmatprep.mubr.bf16.mxu1 %v188_v7  ;;  %729 = vmatprep.mubr.bf16.mxu0 %v192_v8 }
  0x83   :  { %620 = vmatpush1.bf16.xpose.msra.mxu1 %v990_v12  ;;  %700 = vmatpush1.bf16.xpose.msra.mxu0 %v994_v13  ;;  %v756_v12 = vand.u32 127, %v75_v2  ;;  %v761_v13 = vstv %s1386_s0  ;;  %s1193_s0 = smov [#allocation13]  }
  0x84   :  { %621 = vmatprep.subr.bf16.mxu1 %v999_v59  ;;  %701 = vmatprep.subr.bf16.mxu0 %v1003_v14  ;;  %s970_s4 = sshll.u32 %s1193_s0, 4  ;;  %s971_s4 = int_to_ptr.vmem [resolvable:$true] %s970_s4 }
  0x85   :  { %vm762_vm4 = vcmp.lt.s32.totalorder %v756_v12, %v761_v13  ;;  %s1155_s7 = scalar_lea.vmem %s971_s4, 16  ;;  %s1159_s8 = scalar_lea.vmem %s971_s4, 32 }
  0x86   :  { %v763_v27 = vsel %vm762_vm4, 0.0, %v1191_v26  ;;  %p1156_p10 = scmp.ne.s32.totalorder %s971_s4, %s1155_s7  ;;  %p1160_p11 = scmp.lt.s32.totalorder %s971_s4, %s971_s4 }
  0x87   :  { %p1161_p12 = scmp.lt.s32.totalorder %s1159_s8, %s1155_s7 }
  0x89   :  { %p1162_p13 = por %p1161_p12, %p1160_p11 }
  0x8b   :  { %622 = vmatpush1.bf16.xpose.msra.mxu1 %v998_v22  ;;  %702 = vmatpush1.bf16.xpose.msra.mxu0 %v1002_v23  ;;  %p1163_p0 = pnand %p1162_p13, %p1156_p10 }
  0x8c   :  { %623 = vmatprep.subr.bf16.mxu1 %v1007_v24  ;;  %703 = vmatprep.subr.bf16.mxu0 %v1011_v25 }
  0x93   :  { %624 = vmatpush1.bf16.xpose.msra.mxu1 %v1006_v30  ;;  %704 = vmatpush1.bf16.xpose.msra.mxu0 %v1010_v31  ;;  %v1192_v31 = vmov 0.0  }
  0x94   :  { %625 = vmatprep.subr.bf16.mxu1 %v1015_v32  ;;  %705 = vmatprep.subr.bf16.mxu0 %v1019_v33  ;;  %64 = vst.msk [vmem:[#allocation3] sm:$0x3] %vm62_vm3, %v1192_v31  ;;  %v796_v32 = vld [vmem:[#allocation10] sm:$0xff] }
  0x95   :  { %v862_v33 = vmul.f32 %v796_v32, %v796_v32  ;;  %v799_v37 = vmul.f32 %v796_v32, %v1263_v20 }
  0x97   :  { %v873_v36 = vrot.slane %v862_v33, %v1261_v19  ;;  %v810_v42 = vrot.slane %v799_v37, %v1261_v19 }
  0x99   :  { %v908_v20 = vsel %vm113_vm0, %v873_v36, 0.0  ;;  %v845_v53 = vsel %vm113_vm0, %v810_v42, 0.0 }
  0x9b   :  { %626 = vmatpush1.bf16.xpose.msra.mxu1 %v1014_v38  ;;  %706 = vmatpush1.bf16.xpose.msra.mxu0 %v1018_v39 }
  0x9c   :  { %627 = vmatprep.subr.bf16.mxu1 %v1023_v40  ;;  %707 = vmatprep.subr.bf16.mxu0 %v1027_v41  ;;  %v866_v40 = vcombine.high %v862_v33, %v862_v33  ;;  %v881_v41 = vcombine.high %v873_v36, %v873_v36 }
  0x9e   :  { %v880_v43 = vrot.slane %v866_v40, %v1261_v19  ;;  %v909_v45 = vsel %vm113_vm0, %v881_v41, 0.0 }
  0x9f   :  { %v910_v50 = vadd.f32 %v909_v45, %v908_v20 }
  0xa0   :  { %v911_v51 = vsel %vm113_vm0, %v880_v43, 0.0 }
  0xa3   :  { %628 = vmatpush1.bf16.xpose.msra.mxu1 %v1022_v46  ;;  %708 = vmatpush1.bf16.xpose.msra.mxu0 %v1026_v47  ;;  %v803_v46 = vcombine.high %v799_v37, %v799_v37  ;;  %v818_v47 = vcombine.high %v810_v42, %v810_v42 }
  0xa4   :  { %629 = vmatprep.subr.bf16.mxu1 %v1031_v48  ;;  %709 = vmatprep.subr.bf16.mxu0 %v1035_v49  ;;  %v863_v48 = vmul.f32 %v797_v44, %v797_v44  ;;  %v882_v49 = vcombine.high %v880_v43, %v880_v43 }
  0xa5   :  { %v817_v52 = vrot.slane %v803_v46, %v1261_v19 }
  0xab   :  { %630 = vmatpush1.bf16.xpose.msra.mxu1 %v1030_v57  ;;  %710 = vmatpush1.bf16.xpose.msra.mxu0 %v1034_v58  ;;  %v846_v57 = vsel %vm113_vm0, %v818_v47, 0.0  ;;  %v890_v58 = vrot.slane %v863_v48, %v1261_v19 }
  0xac   :  { %631 = vmatprep.subr.bf16.mxu1 %v1039_v60  ;;  %711 = vmatprep.subr.bf16.mxu0 %v1043_v61  ;;  %v912_v60 = vadd.f32 %v911_v51, %v910_v50  ;;  %v847_v61 = vadd.f32 %v846_v57, %v845_v53 }
  0xb3   :  { %632 = vmatpush1.bf16.xpose.msra.mxu1 %v1038_v62  ;;  %712 = vmatpush1.bf16.xpose.msra.mxu0 %v1042_v63  ;;  %v913_v62 = vsel %vm113_vm0, %v882_v49, 0.0  ;;  %v800_v63 = vmul.f32 %v797_v44, %v1265_v21  ;;  %v774_v44 = vld [vmem:[#allocation3] sm:$0x3] }
  0xb5   :  { %v820_v21 = vcombine.high %v800_v63, %v800_v63 }
  0xba   :  { %650 = vmatmul.mubr.bf16.vlgmr.msra.gmra.mrb[0].mxu1 %v187_v0  ;;  %730 = vmatmul.mubr.bf16.vlgmr.msra.gmra.mrb[0].mxu0 %v191_v1  ;;  %v819_v0 = vcombine.high %v817_v52, %v817_v52  ;;  %v848_v1 = vsel %vm113_vm0, %v817_v52, 0.0 }
  0xdd   :  { %v130_v3 = vpop.xlane.xlu0 %129 }
  0xde   :  { %1069 = vrsqrt.f32 %v130_v3  ;;  %vm133_vm1 = vcmp.eq.f32.partialorder %v130_v3, inf  ;;  %v136_v5 = vand.u32 2147483648, %v130_v3  ;;  %vm135_vm2 = vcmp.eq.f32.partialorder %v130_v3, 0.0 }
  0xe8   :  { %v1070_v4 = vpop.eup %1069 }
  0xe9   :  { %v132_v6 = vmul.f32 %v1070_v4, %v130_v3  ;;  %v914_v4 = vadd.f32 %v913_v62, %v912_v60 }
  0xeb   :  { %v134_v7 = vsel %vm133_vm1, %v130_v3, %v132_v6  ;;  %v883_v3 = vcombine.high %v863_v48, %v863_v48  ;;  %v898_v6 = vcombine.high %v890_v58, %v890_v58 }
  0xec   :  { %v137_v8 = vsel %vm135_vm2, %v136_v5, %v134_v7  ;;  %v849_v5 = vadd.f32 %v848_v1, %v847_v61  ;;  %v915_v7 = vsel %vm113_vm0, %v890_v58, 0.0 }
  0xed   :  { %138 = vst.msk [vmem:[#allocation4] sm:$0x3] %vm62_vm3, %v137_v8  ;;  %v827_v8 = vrot.slane %v800_v63, %v1261_v19  ;;  %v897_v54 = vrot.slane %v883_v3, %v1261_v19 }
  0xef   :  { %v852_v12 = vsel %vm113_vm0, %v827_v8, 0.0 }
  0xf4   :  { %v738_v55 = vld [vmem:[#allocation4] sm:$0x3] }
  0xf5   :  { %741 = vperm.xlu0 %1065, %v738_v55   ;;  %v850_v55 = vsel %vm113_vm0, %v819_v0, 0.0  ;;  %v798_v20 = vld [vmem:[#allocation4] sm:$0x3] }
 0x174   :  { %v742_v9 = vpop.permute.xlu0 %741 }
 0x175   :  { %v750_v10 = vmul.f32 %v1044_v56, %v742_v9  ;;  %v916_v56 = vadd.f32 %v915_v7, %v914_v4  ;;  %v851_v9 = vadd.f32 %v850_v55, %v849_v5 }
 0x177   :  { %v751_v11 = vmax.f32 %v750_v10, 1e-08  ;;  %v917_v10 = vsel %vm113_vm0, %v898_v6, 0.0 }
 0x178   :  { %v918_v13 = vadd.f32 %v917_v10, %v916_v56 }
 0x179   :  { %1071 = vrcp.f32 %v751_v11  ;;  %v835_v11 = vcombine.high %v827_v8, %v827_v8 }
 0x183   :  { %v1072_v59 = vpop.eup %1071 }
 0x184   :  { %v753_v17 = vmul.f32 14.285714, %v1072_v59  ;;  %v853_v59 = vadd.f32 %v852_v12, %v851_v9 }
 0x18d   :  { %v651_v14 = vpop.f32.mrb[0].mxu1  ;;  %v731_v15 = vpop.f32.mrb[0].mxu0 }
 0x18e   :  { %v653_v16 = vpop.f32.mrb[1].mxu1  ;;  %v1045_v18 = vadd.f32 %v731_v15, %v651_v14  ;;  %v733_v22 = vpop.f32.mrb[1].mxu0  ;;  %v899_v14 = vcombine.high %v897_v54, %v897_v54  ;;  %v919_v15 = vsel %vm113_vm0, %v897_v54, 0.0 }
 0x18f   :  { %v654_v23 = vpop.f32.mrb[2].mxu1  ;;  %v734_v24 = vpop.f32.mrb[2].mxu0  ;;  %v834_v16 = vrot.slane %v820_v21, %v1261_v19 }
 0x190   :  { %v655_v25 = vpop.f32.mrb[3].mxu1  ;;  %v754_v28 = vmul.f32 %v1045_v18, %v753_v17  ;;  %v735_v29 = vpop.f32.mrb[3].mxu0  ;;  %v854_v17 = vsel %vm113_vm0, %v835_v11, 0.0  ;;  %v920_v18 = vadd.f32 %v919_v15, %v918_v13  ;;  %v921_v23 = vsel %vm113_vm0, %v899_v14, 0.0 }
 0x191   :  { %v855_v22 = vadd.f32 %v854_v17, %v853_v59  ;;  %v836_v24 = vcombine.high %v834_v16, %v834_v16  ;;  %v856_v25 = vsel %vm113_vm0, %v834_v16, 0.0 }
 0x192   :  { %v1326_v2 = vadd.f32 %v763_v27, %v754_v28  ;;  %v922_v26 = vadd.f32 %v921_v23, %v920_v18 }
 0x193   :  { %v857_v27 = vadd.f32 %v856_v25, %v855_v22  ;;  %v858_v28 = vsel %vm113_vm0, %v836_v24, 0.0 }
 0x194   :  { %v767_v30 = vsel %vm113_vm0, %v1326_v2, -inf }
 0x195   :  { %768 = vmax.xlane.f32.xlu1 %v767_v30  ;;  %v859_v29 = vadd.f32 %v858_v28, %v857_v27 }
 0x222   :  { %v769_v35 = vpop.xlane.xlu1 %768 }
 0x223   :  { %v1336_v38 = vmax.f32 %v1331_v34, %v769_v35 }
 0x225   :  { %v771_v39 = vsub.f32 %v1331_v34, %v1336_v38  ;;  %790 = vst.msk [vmem:[#allocation2] sm:$0x3] %vm62_vm3, %v1336_v38  ;;  %778 = vperm.xlu1 %1066, %v1336_v38  }
 0x227   :  { %v772_v36 = vmul.f32 1.442695, %v771_v39 }
 0x22c   :  { %v937_v53 = vld [vmem:[#allocation2] sm:$0x3] }
 0x249   :  { %923 = vadd.xlane.f32.xlu1 %v922_v26 }
 0x24d   :  { %860 = vadd.xlane.f32.xlu1 %v859_v29 }
 0x2a4   :  { %v779_v30 = vpop.permute.xlu1 %778 }
 0x2a5   :  { %v781_v31 = vsub.f32 %v1326_v2, %v779_v30 }
 0x2a7   :  { %v782_v19 = vmul.f32 1.442695, %v781_v31 }
 0x2a9   :  { %1073 = vpow2.f32 %v782_v19 }
 0x2b3   :  { %v1074_v32 = vpop.eup %1073 }
 0x2b4   :  { %v784_v33 = vsel %vm113_vm0, %v1074_v32, 0.0 }
 0x2b5   :  { %785 = vadd.xlane.f32.xlu0 %v784_v33 }
 0x2d6   :  { %v924_v35 = vpop.xlane.xlu1 %923 }
 0x2d7   :  { %1075 = vrsqrt.f32 %v924_v35  ;;  %vm927_vm5 = vcmp.eq.f32.partialorder %v924_v35, inf  ;;  %v930_v41 = vand.u32 2147483648, %v924_v35  ;;  %vm929_vm6 = vcmp.eq.f32.partialorder %v924_v35, 0.0 }
 0x2d8   :  { %1077 = vpow2.f32 %v772_v36 }
 0x2da   :  { %v861_v39 = vpop.xlane.xlu1 %860 }
 0x2e1   :  { %v1076_v37 = vpop.eup %1075 }
 0x2e2   :  { %v926_v40 = vmul.f32 %v1076_v37, %v924_v35  ;;  %v1078_v2 = vpop.eup %1077 }
 0x2e3   :  { %v775_v46 = vmul.f32 %v1078_v2, %v774_v44 }
 0x2e4   :  { %v928_v42 = vsel %vm927_vm5, %v924_v35, %v926_v40 }
 0x2e5   :  { %v931_v43 = vsel %vm929_vm6, %v930_v41, %v928_v42 }
 0x2e6   :  { %v932_v45 = vmul.f32 %v931_v43, %v798_v20 }
 0x2e8   :  { %v933_v49 = vmax.f32 %v932_v45, 1e-08 }
 0x2ea   :  { %1079 = vrcp.f32 %v933_v49 }
 0x2f4   :  { %v1080_v38 = vpop.eup %1079 }
 0x2f5   :  { %v935_v50 = vmul.f32 %v1080_v38, %v861_v39 }
 0x2f7   :  { %v936_v57 = vmul.f32 14.285714, %v935_v50 }
 0x342   :  { %v786_v47 = vpop.xlane.xlu0 %785 }
 0x343   :  { %v787_v48 = vadd.f32 %v786_v47, %v775_v46 }
 0x345   :  { %789 = vst.msk [vmem:[#allocation3] sm:$0x3] %vm62_vm3, %v787_v48 }
 0x34c   :  { %v938_v34 = vld [vmem:[#allocation3] sm:$0x3] }
 0x34d   :  { %1081 = vlog2.f32 %v938_v34 }
 0x357   :  { %v1082_v51 = vpop.eup %1081 }
 0x358   :  { %v940_v52 = vmul.f32 0.6931472, %v1082_v51 }
 0x35a   :  { %v941_v58 = vadd.f32 %v940_v52, %v937_v53 }
 0x35c   :  { %v942_v60 = vmax.f32 %v941_v58, %v936_v57 }
 0x35e   :  { %v943_v61 = vsub.f32 %v941_v58, %v942_v60  ;;  %v946_v62 = vsub.f32 %v936_v57, %v942_v60 }
 0x360   :  { %v944_v63 = vmul.f32 1.442695, %v943_v61  ;;  %v947_v0 = vmul.f32 1.442695, %v946_v62 }
 0x362   :  { %1083 = vpow2.f32 %v944_v63 }
 0x363   :  { %1085 = vpow2.f32 %v947_v0 }
 0x36c   :  { %v1084_v1 = vpop.eup %1083 }
 0x36d   :  { %v1086_v3 = vpop.eup %1085 }
 0x36e   :  { %v949_v4 = vadd.f32 %v1086_v3, %v1084_v1 }
 0x370   :  { %1087 = vlog2.f32 %v949_v4 }
 0x37a   :  { %v1088_v5 = vpop.eup %1087 }
 0x37b   :  { %v951_v6 = vmul.f32 0.6931472, %v1088_v5 }
 0x37d   :  { %v952_v7 = vadd.f32 %v951_v6, %v942_v60 }
 0x37f   :  { %v953_v8 = vsub.f32 %v952_v7, %v936_v57 }
 0x381   :  { %v954_v55 = vsel %vm62_vm3, %v953_v8, 0.0 }
 0x382   :  { %v955_v54 = vrot.slane %v954_v55, 4 }
 0x384   :  { %v956_v56 = vadd.f32 %v955_v54, %v954_v55 }
 0x386   :  { %v957_v9 = vrot.slane %v956_v56, 2 }
 0x388   :  { %v958_v10 = vadd.f32 %v957_v9, %v956_v56 }
 0x38a   :  { %v959_v21 = vrot.slane %v958_v10, 1 }
 0x38c   :  { %v960_v11 = vadd.f32 %v959_v21, %v958_v10 }
 0x38e   :  { %v961_v12 = vmul.f32 0.5, %v960_v11 }
 0x390   :  { %963 = vst.msk [vmem:[#allocation13] sm:$0x1] %vm962_vm7, %v961_v12 }
 0x391   :  { %1166 = shalt.err (!%p1163_p0)
}
 0x392   :  { %s1167_s11 = scalar_lea.hbm %s1391_s5, 16 }
 0x393   :  { %p1168_p1 = scmp.ne.s32.totalorder %s1391_s5, %s1167_s11  ;;  %p1171_p2 = scmp.lt.u32.totalorder %s1167_s11, %s1391_s5 }
 0x395   :  { %p1173_p3 = pnand %p1171_p2, %p1168_p1 }
 0x397   :  { %1176 = shalt.err (!%p1173_p3)
}
 0x398   :  { %973 = dma.vmem_to_hbm [thread:$0]  %s971_s4, 16, %s1391_s5, [#allocation9]  }
 0x399   :  { %1181 = dma.done.wait [#allocation9], 16  }
 0x39a   :  { %1182 = vsyncadd [#allocation9], 4294967280 }
 0x39b   :  { %977 = vsyncpa [#allocation8], 1 }
 0x39c   :  { %978 = vsyncpa [#allocation11], 1 }
 0x39d   :  { %979 = vsyncpa [#allocation9], 1 }

</bundles_post_ra>
